<compile_context>
chip_gen: v7x
topology: tpu7x:2x2x1
jax: 0.10.0
libtpu: 0.0.40
codegen_flags: <defaults>
</compile_context>

<pallas_src>
import math
import functools

import jax
import jax.numpy as jnp
from jax import lax
from jax.experimental import pallas as pl
from jax.experimental.pallas import tpu as pltpu


def _pick_tile(dim, preferred, quantum):
    """Largest tile <= preferred that divides dim (and is a multiple of the
    hardware quantum), else the full dim (a full-extent block is always legal)."""
    if dim <= preferred:
        return dim
    t = preferred
    while t >= quantum:
        if dim % t == 0:
            return t
        t //= 2
    return dim


def _vmem_limit(nbytes):
    """Explicit scoped-VMEM budget: 2x estimated footprint, clamped to a range
    that is safe on every generation (v7x physical VMEM is 64 MiB)."""
    return int(min(64 * 1024 * 1024, max(32 * 1024 * 1024, 2 * nbytes)))


# --------------------------------------------------------------------------- #
# Pass 1: fused QKV projection (tiled matmul + bias)
# --------------------------------------------------------------------------- #
def _linear_kernel(x_ref, w_ref, b_ref, o_ref):
    acc = jnp.dot(x_ref[...], w_ref[...], preferred_element_type=jnp.float32)
    o_ref[...] = (acc + b_ref[...]).astype(o_ref.dtype)


def fused_linear(x2d, w, b):
    """(M, K) @ (K, N) + (1, N), gridded over M rows and N columns."""
    M, K = x2d.shape
    _, N = w.shape
    tm = _pick_tile(M, 256, 8)
    tn = _pick_tile(N, 512, 128)
    # TODO(synk): for very large K (= model dim), add a third grid axis over K
    # with an f32 accumulator instead of keeping the full contraction resident.
    itm = jnp.dtype(x2d.dtype).itemsize
    est = (2 * (tm * K + K * tn + tn) * itm   # double-buffered inputs
           + 2 * tm * tn * itm                # double-buffered output
           + tm * tn * 4)                     # f32 accumulate
    return pl.pallas_call(
        _linear_kernel,
        out_shape=jax.ShapeDtypeStruct((M, N), x2d.dtype),
        grid_spec=pltpu.PrefetchScalarGridSpec(
            num_scalar_prefetch=0,
            grid=(M // tm, N // tn),
            in_specs=[
                pl.BlockSpec((tm, K), lambda i, j: (i, 0)),
                pl.BlockSpec((K, tn), lambda i, j: (0, j)),
                pl.BlockSpec((1, tn), lambda i, j: (0, j)),
            ],
            out_specs=pl.BlockSpec((tm, tn), lambda i, j: (i, j)),
        ),
        compiler_params=pltpu.CompilerParams(
            dimension_semantics=("parallel", "parallel"),
            vmem_limit_bytes=_vmem_limit(est),
        ),
    )(x2d, w, b)


# --------------------------------------------------------------------------- #
# Pass 2: per-head attention + output projection (head axis = MXU reduction)
# --------------------------------------------------------------------------- #
def _attn_kernel(q_ref, k_ref, v_ref, wo_ref, bo_ref, o_ref, acc_ref, *, scale):
    """One (batch, query-tile, head) grid step.

    q_ref : (1, 1, TQ, dh)  this head's query rows
    k_ref : (1, 1, L,  dh)  this head's keys
    v_ref : (1, 1, L,  dh)  this head's values
    wo_ref: (1, dh, D)      this head's slice of the output projection weight
    bo_ref: (1, D)          output projection bias (f32)
    o_ref : (1, TQ, D)      output rows (revisited across the head axis)
    acc_ref: VMEM (TQ, D) f32 accumulator, carried across the head sweep
    """
    h = pl.program_id(2)

    @pl.when(h == 0)
    def _init():
        acc_ref[...] = jnp.zeros_like(acc_ref)

    q = q_ref[0, 0]                                    # (TQ, dh)
    k = k_ref[0, 0]                                    # (L, dh)
    v = v_ref[0, 0]                                    # (L, dh)

    # Scores for THIS head only -> only one (TQ, L) f32 tile is ever live.
    s = lax.dot_general(q, k, (((1,), (1,)), ((), ())),
                        preferred_element_type=jnp.float32)     # (TQ, L)
    s = s * scale

    # Numerically-stable softmax; element-wise math in f32, reciprocal on EUP.
    m = jnp.max(s, axis=-1, keepdims=True)
    p = jnp.exp(s - m)
    denom = jnp.sum(p, axis=-1, keepdims=True)
    p = p * pl.reciprocal(denom, approx=True)
    # TODO(synk): dropout on attention probabilities omitted (eval-mode identity).

    ctx = jnp.dot(p.astype(v.dtype), v,
                  preferred_element_type=jnp.float32)           # (TQ, dh)

    # Output projection for this head accumulated directly into (TQ, D) f32:
    # the head-sum is folded into MXU accumulation (no (H, TQ, D) intermediate,
    # no H-1 full-tile VPU adds).
    acc_ref[...] += jnp.dot(ctx.astype(wo_ref.dtype), wo_ref[0],
                            preferred_element_type=jnp.float32)

    @pl.when(h == pl.num_programs(2) - 1)
    def _finalize():
        o_ref[0] = (acc_ref[...] + bo_ref[...]).astype(o_ref.dtype)


def multihead_attention(x, params, n_heads, *, compute_dtype=jnp.bfloat16):
    """x: (B, L, D). params: Q/K/V/O weights (D, D) and biases (1, D)."""
    B, L, D = x.shape
    assert D % n_heads == 0
    dh = D // n_heads
    cdt = compute_dtype

    # ---- Pass 1: fused QKV projection (own Pallas pass; frees the attention
    # kernel's VMEM budget and keeps its grid fully parallel). ----------------
    w_qkv = jnp.concatenate(
        [params["wq"], params["wk"], params["wv"]], axis=1).astype(cdt)   # (D, 3D)
    b_qkv = jnp.concatenate(
        [params["bq"], params["bk"], params["bv"]], axis=1).astype(cdt)   # (1, 3D)
    qkv = fused_linear(x.reshape(B * L, D).astype(cdt), w_qkv, b_qkv)     # (B*L, 3D)

    # Head split / transpose is pure layout plumbing; leave it to XLA.
    qkv = qkv.reshape(B, L, 3, n_heads, dh)
    q = qkv[:, :, 0].transpose(0, 2, 1, 3)   # (B, H, L, dh)
    k = qkv[:, :, 1].transpose(0, 2, 1, 3)
    v = qkv[:, :, 2].transpose(0, 2, 1, 3)

    wo = params["wo"].reshape(n_heads, dh, D).astype(cdt)   # per-head Wo slices
    bo = params["bo"].astype(jnp.float32)                   # exact bias add in f32

    q_tile = _pick_tile(L, 256, 8)
    num_q_tiles = L // q_tile

    # TODO(synk): for dh < 128, pack 128 // dh heads per lane group to avoid
    # lane-sparse Q/K/V blocks; for very long L, tile K/V along L with an
    # online softmax instead of full-L key/value blocks.
    itm = jnp.dtype(cdt).itemsize
    est = (2 * (q_tile * dh + 2 * L * dh + dh * D + D) * itm    # dbl-buffered inputs
           + 2 * q_tile * D * jnp.dtype(x.dtype).itemsize       # dbl-buffered output
           + q_tile * D * 4                                     # f32 accumulator
           + 2 * q_tile * L * 4 + q_tile * dh * 4)              # f32 s / p / ctx

    kernel = functools.partial(_attn_kernel, scale=1.0 / math.sqrt(dh))

    return pl.pallas_call(
        kernel,
        out_shape=jax.ShapeDtypeStruct((B, L, D), x.dtype),
        grid_spec=pltpu.PrefetchScalarGridSpec(
            num_scalar_prefetch=0,
            grid=(B, num_q_tiles, n_heads),          # head axis last = reduction
            in_specs=[
                pl.BlockSpec((1, 1, q_tile, dh), lambda b, qi, h: (b, h, qi, 0)),  # Q
                pl.BlockSpec((1, 1, L, dh),      lambda b, qi, h: (b, h, 0, 0)),   # K
                pl.BlockSpec((1, 1, L, dh),      lambda b, qi, h: (b, h, 0, 0)),   # V
                pl.BlockSpec((1, dh, D),         lambda b, qi, h: (h, 0, 0)),      # Wo_h
                pl.BlockSpec((1, D),             lambda b, qi, h: (0, 0)),         # bo
            ],
            out_specs=pl.BlockSpec((1, q_tile, D), lambda b, qi, h: (b, qi, 0)),
            scratch_shapes=[pltpu.VMEM((q_tile, D), jnp.float32)],
        ),
        compiler_params=pltpu.CompilerParams(
            dimension_semantics=("parallel", "parallel", "arbitrary"),
            vmem_limit_bytes=_vmem_limit(est),
        ),
    )(q, k, v, wo, bo)


# --------------------------------------------------------------------------- #
# Init / reference / test
# --------------------------------------------------------------------------- #
def init_params(key, d_input):
    """Deterministic init mimicking nn.Linear (uniform +/- 1/sqrt(fan_in))."""
    bound = 1.0 / math.sqrt(d_input)
    keys = jax.random.split(key, 8)

    def u(k, shape):
        return jax.random.uniform(k, shape, jnp.float32, -bound, bound)

    return {
        "wq": u(keys[0], (d_input, d_input)), "bq": u(keys[1], (1, d_input)),
        "wk": u(keys[2], (d_input, d_input)), "bk": u(keys[3], (1, d_input)),
        "wv": u(keys[4], (d_input, d_input)), "bv": u(keys[5], (1, d_input)),
        "wo": u(keys[6], (d_input, d_input)), "bo": u(keys[7], (1, d_input)),
    }


def reference_mha(x, params, n_heads):
    """Plain-JAX reference replicating the PyTorch forward (eval mode)."""
    B, L, D = x.shape
    dh = D // n_heads
    q = x @ params["wq"] + params["bq"][0]
    k = x @ params["wk"] + params["bk"][0]
    v = x @ params["wv"] + params["bv"][0]
    q = q.reshape(B, L, n_heads, dh).transpose(0, 2, 1, 3)
    k = k.reshape(B, L, n_heads, dh).transpose(0, 2, 1, 3)
    v = v.reshape(B, L, n_heads, dh).transpose(0, 2, 1, 3)
    s = jnp.einsum("bhqd,bhkd->bhqk", q, k) / math.sqrt(dh)
    p = jax.nn.softmax(s, axis=-1)
    o = jnp.einsum("bhqk,bhkd->bhqd", p, v).transpose(0, 2, 1, 3).reshape(B, L, D)
    return o @ params["wo"] + params["bo"][0]


if __name__ == "__main__":
    B, L, D, H = 2, 8, 32, 4

    key = jax.random.PRNGKey(0)
    kx, kp = jax.random.split(key)
    x = jax.random.normal(kx, (B, L, D), dtype=jnp.float32)
    params = init_params(kp, D)

    ref = reference_mha(x, params, H)

    # Full-precision path: tight check of the kernel math (approx reciprocal
    # on the EUP introduces ~1e-4-level differences).
    out_f32 = jax.block_until_ready(
        multihead_attention(x, params, H, compute_dtype=jnp.float32))
    assert out_f32.shape == (B, L, D)
    assert jnp.allclose(out_f32, ref, atol=1e-3, rtol=1e-3), "f32 mismatch vs reference"

    # Production path: bf16 operands (MXU-native), f32 accumulation; expect
    # ~1e-2-level absolute drift vs the f32 reference.
    out_bf16 = jax.block_until_ready(
        multihead_attention(x, params, H, compute_dtype=jnp.bfloat16))
    assert out_bf16.shape == (B, L, D)
    assert jnp.allclose(out_bf16, ref, atol=3e-2, rtol=3e-2), "bf16 mismatch vs reference"

    print("KERNEL_OK")
</pallas_src>

<mosaic_0001>
module attributes {stable_mosaic.version = 11 : i64} {
  func.func @_linear_kernel(%arg0: i32, %arg1: i32, %arg2: memref<16x32xf32, #tpu.memory_space<vmem>>, %arg3: memref<32x96xf32, #tpu.memory_space<vmem>>, %arg4: memref<1x96xf32, #tpu.memory_space<vmem>>, %arg5: memref<16x96xf32, #tpu.memory_space<vmem>>) attributes {dimension_semantics = [#tpu.dimension_semantics<parallel>, #tpu.dimension_semantics<parallel>], iteration_bounds = array<i64: 1, 1>, scalar_prefetch = 0 : i64, scratch_operands = 0 : i64, tpu.core_type = #tpu.core_type<tc>, window_params = [{transform_indices = @transform_0, window_bounds = array<i64: 16, 32>}, {transform_indices = @transform_1, window_bounds = array<i64: 32, 96>}, {transform_indices = @transform_2, window_bounds = array<i64: 1, 96>}, {transform_indices = @transform_3, window_bounds = array<i64: 16, 96>}]} {
    %c0 = arith.constant 0 : index
    %c0_0 = arith.constant 0 : index
    %0 = vector.load %arg2[%c0, %c0_0] : memref<16x32xf32, #tpu.memory_space<vmem>>, vector<16x32xf32>
    %c0_1 = arith.constant 0 : index
    %c0_2 = arith.constant 0 : index
    %1 = vector.load %arg3[%c0_1, %c0_2] : memref<32x96xf32, #tpu.memory_space<vmem>>, vector<32x96xf32>
    %cst = arith.constant dense<0.000000e+00> : vector<16x96xf32>
    %2 = tpu.matmul %0, %1, %cst {dimension_numbers = #tpu.dot_dimension_numbers<[1], [0], [0], [1], [0, 0, 1, 1], [], []>} : vector<16x32xf32>, vector<32x96xf32>, vector<16x96xf32> -> vector<16x96xf32>
    %c0_3 = arith.constant 0 : index
    %c0_4 = arith.constant 0 : index
    %3 = vector.load %arg4[%c0_3, %c0_4] : memref<1x96xf32, #tpu.memory_space<vmem>>, vector<1x96xf32>
    %4 = vector.broadcast %3 : vector<1x96xf32> to vector<16x96xf32>
    %5 = arith.addf %2, %4 : vector<16x96xf32>
    %c0_5 = arith.constant 0 : index
    %c0_6 = arith.constant 0 : index
    %6 = vector.load %arg5[%c0_5, %c0_6] : memref<16x96xf32, #tpu.memory_space<vmem>>, vector<16x96xf32>
    tpu.vector_store %arg5[%c0_5, %c0_6], %5 {strides = array<i32>} : memref<16x96xf32, #tpu.memory_space<vmem>>, vector<16x96xf32>,
    return
  }
  func.func @transform_0(%arg0: i32, %arg1: i32) -> (i32, i32) {
    %c0_i32 = arith.constant 0 : i32
    %c0_i32_0 = arith.constant 0 : i32
    return %arg0, %c0_i32 : i32, i32
  }
  func.func @transform_1(%arg0: i32, %arg1: i32) -> (i32, i32) {
    %c0_i32 = arith.constant 0 : i32
    %c0_i32_0 = arith.constant 0 : i32
    return %c0_i32, %arg1 : i32, i32
  }
  func.func @transform_2(%arg0: i32, %arg1: i32) -> (i32, i32) {
    %c0_i32 = arith.constant 0 : i32
    %c0_i32_0 = arith.constant 0 : i32
    return %c0_i32, %arg1 : i32, i32
  }
  func.func @transform_3(%arg0: i32, %arg1: i32) -> (i32, i32) {
    %c0_i32 = arith.constant 0 : i32
    return %arg0, %arg1 : i32, i32
  }
}

</mosaic_0001>

<bundles_post_ra>
// kernel: tpu_custom_call.1
= control target key start
LH: loop header
LB: loop body
LE: loop exit
PB: predicated region body
PF: predicated region fallthrough
CT: control target
= control target key end

     0   :  { %8 = vsyncpa [#allocation3], 0  ;;  %s337_s0 = inlined_call_operand.hbm [shape: f32[16,32], index: 0, kind: input, shape index: {}]   ;;  %s338_s1 = inlined_call_operand.hbm [shape: f32[32,96], index: 1, kind: input, shape index: {}]   ;;  %s339_s2 = inlined_call_operand.vmem [shape: f32[1,96], index: 2, kind: input, shape index: {}]   ;;  %s340_s3 = inlined_call_operand.hbm [shape: f32[16,96], index: 3, kind: output, shape index: {}]  }
   0x1   :  { %9 = vsyncpa [#allocation6], 0 }
   0x2   :  { %10 = vsyncpa [#allocation4], 0  ;;  %s264_s12 = smov [#allocation2]   ;;  %s192_s16 = scalar_lea.hbm %s337_s0, 256 }
   0x3   :  { %s16_s13 = sshll.u32 %s264_s12, 4  ;;  %p193_p0 = scmp.ne.s32.totalorder %s337_s0, %s192_s16  ;;  %s17_s13 = int_to_ptr.vmem [resolvable:$true] %s16_s13 }
   0x4   :  { %p196_p1 = scmp.lt.u32.totalorder %s192_s16, %s337_s0 }
   0x6   :  { %p198_p2 = pnand %p196_p1, %p193_p0 }
   0x8   :  { %201 = shalt.err (!%p198_p2)
}
   0x9   :  { %s202_s21 = scalar_lea.vmem %s17_s13, 256  ;;  %p207_p4 = scmp.lt.s32.totalorder %s17_s13, %s17_s13 }
   0xa   :  { %p203_p3 = scmp.ne.s32.totalorder %s17_s13, %s202_s21  ;;  %p208_p5 = scmp.lt.s32.totalorder %s202_s21, %s202_s21 }
   0xc   :  { %p209_p6 = por %p208_p5, %p207_p4 }
   0xe   :  { %p210_p7 = pnand %p209_p6, %p203_p3 }
  0x10   :  { %213 = shalt.err (!%p210_p7)
}
  0x11   :  { %s265_s22 = smov 128   ;;  %s266_s23 = smov 8  }
  0x12   :  { %22 = dma.hbm_to_vmem [thread:$0]  %s337_s0, 256, %s17_s13, [#allocation3], %s265_s22, %s265_s22, %s266_s23  }
  0x13   :  { %s267_s26 = smov [#allocation5]   ;;  %s214_s30 = scalar_lea.hbm %s338_s1, 512 }
  0x14   :  { %s28_s27 = sshll.u32 %s267_s26, 4  ;;  %p215_p8 = scmp.ne.s32.totalorder %s338_s1, %s214_s30  ;;  %s29_s27 = int_to_ptr.vmem [resolvable:$true] %s28_s27 }
  0x15   :  { %p218_p9 = scmp.lt.u32.totalorder %s214_s30, %s338_s1 }
  0x17   :  { %p220_p10 = pnand %p218_p9, %p215_p8 }
  0x19   :  { %223 = shalt.err (!%p220_p10)
}
  0x1a   :  { %s224_s8 = scalar_lea.vmem %s29_s27, 512  ;;  %p229_p12 = scmp.lt.s32.totalorder %s29_s27, %s29_s27 }
  0x1b   :  { %p225_p11 = scmp.ne.s32.totalorder %s29_s27, %s224_s8  ;;  %p230_p13 = scmp.lt.s32.totalorder %s224_s8, %s224_s8 }
  0x1d   :  { %p231_p0 = por %p230_p13, %p229_p12 }
  0x1f   :  { %p232_p1 = pnand %p231_p0, %p225_p11 }
  0x21   :  { %235 = shalt.err (!%p232_p1)
}
  0x22   :  { %34 = dma.hbm_to_vmem [thread:$0]  %s338_s1, 512, %s29_s27, [#allocation6], %s265_s22, %s265_s22, %s266_s23  }
  0x23   :  { %258 = dma.done.wait [#allocation3], 256  }
  0x24   :  { %259 = vsyncadd [#allocation3], 4294967040 }
  0x25   :  { %260 = dma.done.wait [#allocation6], 512  }
  0x26   :  { %261 = vsyncadd [#allocation6], 4294966784  ;;  %vm56_vm0 = vcmask 261120   ;;  %v45_v0 = vld [vmem:[#allocation5] sm:$0xff]  ;;  %v46_v1 = vld [vmem:[#allocation5 + $0x8] sm:$0xff]  ;;  %s268_s11 = smov [#allocation7]  }
  0x27   :  { %v47_v2 = vld [vmem:[#allocation5 + $0x10] sm:$0xff]  ;;  %v179_v3 = vpack.c.bf16 %v46_v1, %v45_v0  ;;  %v48_v4 = vld [vmem:[#allocation5 + $0x18] sm:$0xff]  ;;  %s146_s12 = sshll.u32 %s268_s11, 4  ;;  %vm138_vm1 = vcmask 785408   ;;  %s147_s12 = int_to_ptr.vmem [resolvable:$true] %s146_s12 }
  0x28   :  { %v43_v5 = vld [vmem:[#allocation2] sm:$0xff]  ;;  %v183_v6 = vpack.c.bf16 %v48_v4, %v47_v2  ;;  %v44_v7 = vld [vmem:[#allocation2 + $0x8] sm:$0xff]  ;;  %s236_s13 = scalar_lea.vmem %s147_s12, 256  ;;  %p241_p3 = scmp.lt.s32.totalorder %s147_s12, %s147_s12 }
  0x29   :  { %176 = vmatprep.mubr.msk.f32.mxu0 %vm56_vm0, %v43_v5  ;;  %180 = vmatprep.subr.bf16.mxu0 %v179_v3  ;;  %v159_v8 = vld [vmem:[%s339_s2] ss:$0 sm:$0xff]  ;;  %p237_p2 = scmp.ne.s32.totalorder %s147_s12, %s236_s13  ;;  %p242_p4 = scmp.lt.s32.totalorder %s236_s13, %s236_s13 }
  0x2a   :  { %182 = vmatpush3.bf16.msra.mxu0 %v179_v3 }
  0x2b   :  { %184 = vmatprep.subr.bf16.mxu0 %v183_v6  ;;  %p243_p5 = por %p242_p4, %p241_p3 }
  0x2d   :  { %p244_p6 = pnand %p243_p5, %p237_p2 }
  0x2e   :  { %186 = vmatpush3.bf16.msra.mxu0 %v183_v6 }
  0x31   :  { %177 = vmatmul.mubr.msk.f32.vlgmr.msra.gmra.mrb[0].mxu0 %vm56_vm0, %v44_v7 }
 0x104   :  { %v178_v9 = vpop.f32.mrb[0].mxu0 }
 0x105   :  { %v135_v10 = vadd.f32 %v178_v9, %v159_v8  ;;  %v129_v11 = vpop.f32.mrb[1].mxu0 }
 0x106   :  { %v130_v12 = vadd.f32 %v159_v8, %v129_v11 }
 0x107   :  { %140 = vst.msk [vmem:[#allocation7 + $0x8] sm:$0xff] %vm138_vm1, %v135_v10 }
 0x108   :  { %139 = vst.msk [vmem:[#allocation7] sm:$0xff] %vm138_vm1, %v130_v12 }
 0x109   :  { %247 = shalt.err (!%p244_p6)
}
 0x10a   :  { %s248_s2 = scalar_lea.hbm %s340_s3, 256 }
 0x10b   :  { %p249_p7 = scmp.ne.s32.totalorder %s340_s3, %s248_s2  ;;  %p252_p8 = scmp.lt.u32.totalorder %s248_s2, %s340_s3 }
 0x10d   :  { %p254_p9 = pnand %p252_p8, %p249_p7 }
 0x10f   :  { %257 = shalt.err (!%p254_p9)
}
 0x110   :  { %152 = dma.vmem_to_hbm [thread:$0]  %s147_s12, 256, %s340_s3, [#allocation4], %s265_s22, %s265_s22, %s266_s23  }
 0x111   :  { %262 = dma.done.wait [#allocation4], 256  }
 0x112   :  { %263 = vsyncadd [#allocation4], 4294967040 }
 0x113   :  { %156 = vsyncpa [#allocation3], 1 }
 0x114   :  { %157 = vsyncpa [#allocation6], 1 }
 0x115   :  { %158 = vsyncpa [#allocation4], 1 }

</bundles_post_ra>
